<compile_context>
chip_gen: v7x
topology: tpu7x:2x2x1
jax: 0.10.0
libtpu: 0.0.40
codegen_flags: <defaults>
</compile_context>

<pallas_src>
import functools
import math

import jax
import jax.numpy as jnp
from jax.experimental import pallas as pl
from jax.experimental.pallas import tpu as pltpu


def _round_up(a, b):
    return ((a + b - 1) // b) * b


def _label_smoothing_kernel(x_ref, tgt_ref, out_ref, *, padding_idx,
                            smooth_val, confidence, const_c, n_rows, tile_n):
    x = x_ref[...]                                  # (TN, V) log-probs, native dtype
    tgt = tgt_ref[...]                              # (TN, 1) int32 labels

    cols = jax.lax.broadcasted_iota(jnp.int32, x.shape, 1)

    # x at the target column per row: one compare + one select per element,
    # lane reduction accumulated in f32.
    x_tgt = jnp.sum(jnp.where(cols == tgt, x, 0), axis=-1, keepdims=True,
                    dtype=jnp.float32)                          # (TN, 1)
    # full row sum (XLU slot), f32 accumulation
    x_sum = jnp.sum(x, axis=-1, keepdims=True, dtype=jnp.float32)
    # padding column: static lane slice (padding_idx is compile-time)
    x_pad = x[:, padding_idx:padding_idx + 1].astype(jnp.float32)

    row_kl = (jnp.float32(const_c)
              - jnp.float32(smooth_val) * x_sum
              + jnp.float32(smooth_val - confidence) * x_tgt
              + jnp.float32(smooth_val) * x_pad)                 # (TN, 1)

    # zero rows whose target is padding_idx (index_fill_) and any overhang
    # rows of a partial last block (x is NOT padded on the host side).
    row_start = pl.program_id(0) * tile_n
    rows = row_start + jax.lax.broadcasted_iota(jnp.int32, tgt.shape, 0)
    keep = jnp.logical_and(tgt != padding_idx, rows < n_rows)
    row_kl = jnp.where(keep, row_kl, jnp.float32(0.0))

    partial = jnp.sum(row_kl)                                    # scalar

    # This block's private 128-lane output slot; partial goes in lane 0.
    lane = jax.lax.broadcasted_iota(jnp.int32, out_ref.shape, 1)
    out_ref[...] = jnp.where(lane == 0, partial, jnp.float32(0.0))


def label_smoothing_loss(x, target, *, size, padding_idx, smoothing=0.0,
                         tile_n=None):
    """x: (N, V) float log-probs (f32 or bf16), target: (N,) int.

    Returns scalar f32 loss == KLDivLoss(reduction='sum')(x, true_dist).
    """
    N, V = x.shape
    assert V == size
    # smoothing / (size - 2) is undefined for size <= 2 (same hazard as the
    # PyTorch module); make it an explicit error here.
    assert smoothing == 0.0 or size > 2, "size must be > 2 when smoothing > 0"

    confidence = 1.0 - smoothing
    smooth_val = (smoothing / (size - 2)) if size > 2 else 0.0
    const_c = 0.0
    if smooth_val > 0.0:
        const_c += (size - 2) * smooth_val * math.log(smooth_val)
    if confidence > 0.0:
        const_c += confidence * math.log(confidence)

    itemsize = jnp.dtype(x.dtype).itemsize
    v_padded = _round_up(V, 128)                 # VMEM lane padding of the tile

    # Generation-aware VMEM budget.
    try:
        vmem_cap = int(pltpu.get_tpu_info().vmem_capacity_bytes)
    except Exception:
        vmem_cap = 64 * 1024 * 1024              # conservative (v7x-sized)

    if tile_n is None:
        # Per-buffer x tile budget: ~24 MiB on 128 MiB-VMEM parts (v5e/v6e),
        # ~20 MiB on 64 MiB parts (v7x).
        per_buf = (24 << 20) if vmem_cap >= (96 << 20) else (20 << 20)
        rows = per_buf // max(v_padded * itemsize, 1)
        tile_n = int(min(4096, max(8, (rows // 8) * 8)))
        # Keep at least ~4 grid blocks so both v7x TensorCores get work.
        if N >= 32:
            tile_n = min(tile_n, max(8, ((N // 4) // 8) * 8))
    tile_n = max(8, (int(tile_n) // 8) * 8)
    tile_n = min(tile_n, _round_up(N, 8))

    num_blocks = pl.cdiv(N, tile_n)
    n_pad = num_blocks * tile_n

    # Pad ONLY the (tiny) target with padding_idx rows; x stays unpadded and
    # the overhang rows of the partial last block are masked in-kernel.
    if n_pad != N:
        target = jnp.pad(target, (0, n_pad - N), constant_values=padding_idx)
    target2d = target.reshape(n_pad, 1).astype(jnp.int32)

    # VMEM limit: double-buffered x tile + double-buffered (tile_n,128) target
    # tile + slack, never above ~85% of physical VMEM.
    x_blk_bytes = tile_n * v_padded * itemsize
    tgt_blk_bytes = tile_n * 128 * 4
    need = 2 * (x_blk_bytes + tgt_blk_bytes) + (2 << 20)
    vmem_limit = int(min(max(need, 48 << 20), int(vmem_cap * 0.85)))
    vmem_limit = max(vmem_limit, need)

    kernel = functools.partial(
        _label_smoothing_kernel,
        padding_idx=int(padding_idx),
        smooth_val=float(smooth_val),
        confidence=float(confidence),
        const_c=float(const_c),
        n_rows=int(N),
        tile_n=int(tile_n))

    partials = pl.pallas_call(
        kernel,
        out_shape=jax.ShapeDtypeStruct((1, num_blocks * 128), jnp.float32),
        grid_spec=pltpu.PrefetchScalarGridSpec(
            num_scalar_prefetch=0,
            grid=(num_blocks,),
            in_specs=[
                pl.BlockSpec((tile_n, V), lambda i: (i, 0)),
                pl.BlockSpec((tile_n, 1), lambda i: (i, 0)),
            ],
            out_specs=pl.BlockSpec((1, 128), lambda i: (0, i)),
        ),
        compiler_params=pltpu.CompilerParams(
            dimension_semantics=("parallel",),
            vmem_limit_bytes=vmem_limit),
        cost_estimate=pl.CostEstimate(
            flops=3 * N * V,
            transcendentals=0,
            bytes_accessed=N * V * itemsize + n_pad * 4
                           + num_blocks * 128 * 4),
    )(x, target2d)

    return jnp.sum(partials)


def _reference(x, target, *, size, padding_idx, smoothing):
    confidence = 1.0 - smoothing
    N, V = x.shape
    x = x.astype(jnp.float32)
    true_dist = jnp.full((N, V), smoothing / (size - 2), jnp.float32)
    true_dist = true_dist.at[jnp.arange(N), target].set(confidence)
    true_dist = true_dist.at[:, padding_idx].set(0.0)
    true_dist = jnp.where((target == padding_idx)[:, None], 0.0, true_dist)
    kl = jnp.where(true_dist > 0, true_dist * (jnp.log(true_dist) - x), 0.0)
    return jnp.sum(kl)


if __name__ == "__main__":
    # Module config (deterministic, synthetic)
    size = 16           # vocab size (x.size(1))
    padding_idx = 0
    smoothing = 0.1

    # Inputs: batch=2, seq=8 -> N=16 flattened token positions
    batch, seq = 2, 8
    N = batch * seq
    key = jax.random.PRNGKey(0)
    k1, k2 = jax.random.split(key)

    logits = jax.random.normal(k1, (N, size), dtype=jnp.float32)
    x = jax.nn.log_softmax(logits, axis=-1)          # KLDivLoss expects log-probs
    target = jax.random.randint(k2, (N,), 0, size, dtype=jnp.int32)
    # force a few padding positions
    target = target.at[3].set(padding_idx).at[10].set(padding_idx)

    # 1) default tiling path
    loss = label_smoothing_loss(
        x, target, size=size, padding_idx=padding_idx, smoothing=smoothing)
    loss = jax.block_until_ready(loss)
    ref = _reference(x, target, size=size, padding_idx=padding_idx,
                     smoothing=smoothing)
    assert jnp.allclose(loss, ref, rtol=1e-5, atol=1e-5), (loss, ref)

    # 2) ragged N (partial last block, no x padding) + multiple blocks
    loss2 = label_smoothing_loss(
        x[:13], target[:13], size=size, padding_idx=padding_idx,
        smoothing=smoothing, tile_n=8)
    loss2 = jax.block_until_ready(loss2)
    ref2 = _reference(x[:13], target[:13], size=size, padding_idx=padding_idx,
                      smoothing=smoothing)
    assert jnp.allclose(loss2, ref2, rtol=1e-5, atol=1e-5), (loss2, ref2)

    # 3) smoothing = 0 edge case (no log-of-zero hazard in the closed form)
    loss3 = label_smoothing_loss(
        x, target, size=size, padding_idx=padding_idx, smoothing=0.0)
    loss3 = jax.block_until_ready(loss3)
    ref3 = _reference(x, target, size=size, padding_idx=padding_idx,
                      smoothing=0.0)
    assert jnp.allclose(loss3, ref3, rtol=1e-5, atol=1e-5), (loss3, ref3)

    # 4) bf16 input path (no blanket f32 upcast of the tile; f32 accumulation)
    x_bf16 = x.astype(jnp.bfloat16)
    loss4 = label_smoothing_loss(
        x_bf16, target, size=size, padding_idx=padding_idx, smoothing=smoothing)
    loss4 = jax.block_until_ready(loss4)
    ref4 = _reference(x_bf16, target, size=size, padding_idx=padding_idx,
                      smoothing=smoothing)
    assert jnp.allclose(loss4, ref4, rtol=1e-3, atol=1e-3), (loss4, ref4)

    print("KERNEL_OK")
</pallas_src>

<mosaic_0001>
module attributes {stable_mosaic.version = 11 : i64} {
  func.func @_label_smoothing_kernel(%arg0: i32, %arg1: memref<16x16xf32, #tpu.memory_space<vmem>>, %arg2: memref<16x1xi32, #tpu.memory_space<vmem>>, %arg3: memref<1x128xf32, #tpu.memory_space<vmem>>) attributes {dimension_semantics = [#tpu.dimension_semantics<parallel>], iteration_bounds = array<i64: 1>, scalar_prefetch = 0 : i64, scratch_operands = 0 : i64, tpu.core_type = #tpu.core_type<tc>, window_params = [{transform_indices = @transform_0, window_bounds = array<i64: 16, 16>}, {transform_indices = @transform_1, window_bounds = array<i64: 16, 1>}, {transform_indices = @transform_2, window_bounds = array<i64: 1, 128>}]} {
    %c0 = arith.constant 0 : index
    %c0_0 = arith.constant 0 : index
    %0 = vector.load %arg1[%c0, %c0_0] : memref<16x16xf32, #tpu.memory_space<vmem>>, vector<16x16xf32>
    %c0_1 = arith.constant 0 : index
    %c0_2 = arith.constant 0 : index
    %1 = vector.load %arg2[%c0_1, %c0_2] : memref<16x1xi32, #tpu.memory_space<vmem>>, vector<16x1xi32>
    %2 = tpu.iota {dimensions = array<i32: 1>} : vector<16x16xi32>
    %3 = vector.broadcast %1 : vector<16x1xi32> to vector<16x16xi32>
    %4 = arith.cmpi eq, %2, %3 : vector<16x16xi32>
    %c0_i32 = arith.constant 0 : i32
    %5 = arith.sitofp %c0_i32 : i32 to f32
    %6 = vector.broadcast %5 : f32 to vector<16x16xf32>
    %7 = arith.select %4, %0, %6 : vector<16x16xi1>, vector<16x16xf32>
    %cst = arith.constant dense<0.000000e+00> : vector<16xf32>
    %8 = vector.multi_reduction <add>, %7, %cst [1] : vector<16x16xf32> to vector<16xf32>
    %9 = vector.shape_cast %8 : vector<16xf32> to vector<16x1xf32>
    %cst_3 = arith.constant dense<0.000000e+00> : vector<16xf32>
    %10 = vector.multi_reduction <add>, %0, %cst_3 [1] : vector<16x16xf32> to vector<16xf32>
    %11 = vector.shape_cast %10 : vector<16xf32> to vector<16x1xf32>
    %12 = vector.extract_strided_slice %0 {offsets = [0, 0], sizes = [16, 1], strides = [1, 1]} : vector<16x16xf32> to vector<16x1xf32>
    %cst_4 = arith.constant 0.00714285718 : f32
    %13 = vector.broadcast %cst_4 : f32 to vector<16x1xf32>
    %14 = arith.mulf %13, %11 : vector<16x1xf32>
    %cst_5 = arith.constant -0.588988721 : f32
    %15 = vector.broadcast %cst_5 : f32 to vector<16x1xf32>
    %16 = arith.subf %15, %14 : vector<16x1xf32>
    %cst_6 = arith.constant -0.892857134 : f32
    %17 = vector.broadcast %cst_6 : f32 to vector<16x1xf32>
    %18 = arith.mulf %17, %9 : vector<16x1xf32>
    %19 = arith.addf %16, %18 : vector<16x1xf32>
    %cst_7 = arith.constant 0.00714285718 : f32
    %20 = vector.broadcast %cst_7 : f32 to vector<16x1xf32>
    %21 = arith.mulf %20, %12 : vector<16x1xf32>
    %22 = arith.addf %19, %21 : vector<16x1xf32>
    %c16_i32 = arith.constant 16 : i32
    %23 = arith.muli %arg0, %c16_i32 : i32
    %24 = tpu.iota {dimensions = array<i32: 0>} : vector<16x1xi32>
    %25 = vector.broadcast %23 : i32 to vector<16x1xi32>
    %26 = arith.addi %25, %24 : vector<16x1xi32>
    %c0_i32_8 = arith.constant 0 : i32
    %27 = vector.broadcast %c0_i32_8 : i32 to vector<16x1xi32>
    %28 = arith.cmpi ne, %1, %27 : vector<16x1xi32>
    %c16_i32_9 = arith.constant 16 : i32
    %29 = vector.broadcast %c16_i32_9 : i32 to vector<16x1xi32>
    %30 = arith.cmpi slt, %26, %29 : vector<16x1xi32>
    %31 = arith.andi %28, %30 : vector<16x1xi1>
    %cst_10 = arith.constant 0.000000e+00 : f32
    %32 = vector.broadcast %cst_10 : f32 to vector<16x1xf32>
    %33 = arith.select %31, %22, %32 : vector<16x1xi1>, vector<16x1xf32>
    %34 = vector.shape_cast %33 : vector<16x1xf32> to vector<1x16x1xf32>
    %cst_11 = arith.constant dense<0.000000e+00> : vector<1xf32>
    %35 = vector.multi_reduction <add>, %34, %cst_11 [1, 2] : vector<1x16x1xf32> to vector<1xf32>
    %36 = vector.shape_cast %35 : vector<1xf32> to vector<1x1x1xf32>
    %37 = vector.extract %36[0, 0, 0] : f32 from vector<1x1x1xf32>
    %38 = tpu.iota {dimensions = array<i32: 1>} : vector<1x128xi32>
    %c0_i32_12 = arith.constant 0 : i32
    %39 = vector.broadcast %c0_i32_12 : i32 to vector<1x128xi32>
    %40 = arith.cmpi eq, %38, %39 : vector<1x128xi32>
    %cst_13 = arith.constant 0.000000e+00 : f32
    %41 = vector.broadcast %37 : f32 to vector<1x128xf32>
    %42 = vector.broadcast %cst_13 : f32 to vector<1x128xf32>
    %43 = arith.select %40, %41, %42 : vector<1x128xi1>, vector<1x128xf32>
    %c0_14 = arith.constant 0 : index
    %c0_15 = arith.constant 0 : index
    %44 = vector.load %arg3[%c0_14, %c0_15] : memref<1x128xf32, #tpu.memory_space<vmem>>, vector<1x128xf32>
    tpu.vector_store %arg3[%c0_14, %c0_15], %43 {strides = array<i32>} : memref<1x128xf32, #tpu.memory_space<vmem>>, vector<1x128xf32>,
    return
  }
  func.func @transform_0(%arg0: i32) -> (i32, i32) {
    %c0_i32 = arith.constant 0 : i32
    %c0_i32_0 = arith.constant 0 : i32
    return %arg0, %c0_i32 : i32, i32
  }
  func.func @transform_1(%arg0: i32) -> (i32, i32) {
    %c0_i32 = arith.constant 0 : i32
    %c0_i32_0 = arith.constant 0 : i32
    return %arg0, %c0_i32 : i32, i32
  }
  func.func @transform_2(%arg0: i32) -> (i32, i32) {
    %c0_i32 = arith.constant 0 : i32
    %c0_i32_0 = arith.constant 0 : i32
    return %c0_i32, %arg0 : i32, i32
  }
}

</mosaic_0001>

<bundles_post_ra>
// kernel: tpu_custom_call.1
= control target key start
LH: loop header
LB: loop body
LE: loop exit
PB: predicated region body
PF: predicated region fallthrough
CT: control target
= control target key end

     0   :  { %vm28_vm0 = vcmask 130048   ;;  %v128_v2 = vmov 0   ;;  %s173_s0 = inlined_call_operand.vmem [shape: f32[16,16], index: 0, kind: input, shape index: {}]   ;;  %s174_s1 = inlined_call_operand.vmem [shape: s32[16,1], index: 1, kind: input, shape index: {}]   ;;  %s175_s2 = inlined_call_operand.hbm [shape: f32[1,128], index: 2, kind: output, shape index: {}]  }
   0x1   :  { %v14_v0 = vld [vmem:[%s174_s1] sm:$0xff]  ;;  %103 = vset.pattern.permute.xlu0 %v128_v2 }
   0x2   :  { %v12_v1 = vld [vmem:[%s173_s0] sm:$0xff] }
   0x3   :  { %v35_v3 = vsel %vm28_vm0, %v12_v1, 0.0 }
   0x4   :  { %7 = vsyncpa [#allocation3], 0  ;;  %19 = vperm.xlu0 %103, %v14_v0   ;;  %36 = vadd.xlane.f32.xlu1 %v35_v3  ;;  %v15_v4 = vld [vmem:[%s174_s1 + $0x8] sm:$0xff]  ;;  %v16_v7 = vlaneseq  ;;  %v49_v18 = vmul.f32 0.007142857, %v12_v1  ;;  %vm60_vm3 = vcmp.ne.s32.totalorder %v14_v0, 0 }
   0x5   :  { %v13_v5 = vld [vmem:[%s173_s0 + $0x8] sm:$0xff]  ;;  %vm61_vm4 = vcmp.ne.s32.totalorder %v15_v4, 0  ;;  %vm68_vm5 = vcmask 7168   ;;  %s129_s0 = smov [#allocation2]  }
   0x6   :  { %v38_v6 = vsel %vm28_vm0, %v13_v5, 0.0  ;;  %v17_v8 = vand.u32 127, %v16_v7  ;;  %v50_v25 = vmul.f32 0.007142857, %v13_v5  ;;  %s91_s1 = sshll.u32 %s129_s0, 4  ;;  %s92_s1 = int_to_ptr.vmem [resolvable:$true] %s91_s1 }
   0x7   :  { %s104_s18 = scalar_lea.vmem %s92_s1, 16  ;;  %s108_s19 = scalar_lea.vmem %s92_s1, 32 }
   0x8   :  { %22 = vperm.xlu0 %103, %v15_v4   ;;  %39 = vadd.xlane.f32.xlu1 %v38_v6  ;;  %vm81_vm6 = vcmp.eq.s32.totalorder %v17_v8, 0  ;;  %p105_p0 = scmp.ne.s32.totalorder %s92_s1, %s104_s18  ;;  %p109_p1 = scmp.lt.s32.totalorder %s92_s1, %s92_s1 }
   0x9   :  { %p110_p2 = scmp.lt.s32.totalorder %s108_s19, %s104_s18 }
   0xb   :  { %p111_p3 = por %p110_p2, %p109_p1 }
   0xd   :  { %p112_p4 = pnand %p111_p3, %p105_p0 }
  0x83   :  { %v20_v9 = vpop.permute.xlu0 %19 }
  0x84   :  { %vm24_vm1 = vcmp.eq.s32.totalorder %v17_v8, %v20_v9 }
  0x85   :  { %v26_v10 = vsel %vm24_vm1, %v12_v1, 0.0 }
  0x86   :  { %v29_v11 = vsel %vm28_vm0, %v26_v10, 0.0 }
  0x87   :  { %v23_v12 = vpop.permute.xlu0 %22  ;;  %30 = vadd.xlane.f32.xlu0 %v29_v11 }
  0x88   :  { %vm25_vm2 = vcmp.eq.s32.totalorder %v17_v8, %v23_v12 }
  0x89   :  { %v27_v13 = vsel %vm25_vm2, %v13_v5, 0.0 }
  0x8a   :  { %v32_v14 = vsel %vm28_vm0, %v27_v13, 0.0 }
  0x8b   :  { %33 = vadd.xlane.f32.xlu1 %v32_v14 }
  0x91   :  { %v37_v15 = vpop.xlane.xlu1 %36 }
  0x92   :  { %v41_v16 = vmul.f32 0.007142857, %v37_v15 }
  0x94   :  { %v43_v20 = vsub.f32 -0.5889887, %v41_v16 }
  0x95   :  { %v40_v17 = vpop.xlane.xlu1 %39 }
  0x96   :  { %v42_v21 = vmul.f32 0.007142857, %v40_v17 }
  0x98   :  { %v44_v26 = vsub.f32 -0.5889887, %v42_v21 }
 0x114   :  { %v31_v19 = vpop.xlane.xlu0 %30 }
 0x115   :  { %v45_v22 = vmul.f32 -0.89285713, %v31_v19 }
 0x117   :  { %v47_v23 = vadd.f32 %v45_v22, %v43_v20 }
 0x118   :  { %v34_v24 = vpop.xlane.xlu1 %33 }
 0x119   :  { %v51_v27 = vadd.f32 %v49_v18, %v47_v23  ;;  %v46_v28 = vmul.f32 -0.89285713, %v34_v24 }
 0x11b   :  { %v48_v29 = vadd.f32 %v46_v28, %v44_v26  ;;  %v66_v31 = vsel %vm60_vm3, %v51_v27, 0.0 }
 0x11c   :  { %v69_v33 = vsel %vm68_vm5, %v66_v31, 0.0 }
 0x11d   :  { %v52_v30 = vadd.f32 %v50_v25, %v48_v29 }
 0x11f   :  { %v67_v32 = vsel %vm61_vm4, %v52_v30, 0.0 }
 0x120   :  { %v70_v34 = vsel %vm68_vm5, %v67_v32, 0.0 }
 0x121   :  { %v71_v35 = vadd.f32 %v70_v34, %v69_v33 }
 0x123   :  { %72 = vadd.xlane.f32.xlu1 %v71_v35 }
 0x1b0   :  { %v73_v36 = vpop.xlane.xlu1 %72 }
 0x1b1   :  { %v74_v37 = vrot.slane %v73_v36, 4 }
 0x1b3   :  { %v75_v38 = vadd.f32 %v74_v37, %v73_v36 }
 0x1b5   :  { %v76_v39 = vrot.slane %v75_v38, 2 }
 0x1b7   :  { %v77_v40 = vadd.f32 %v76_v39, %v75_v38 }
 0x1b9   :  { %v78_v41 = vrot.slane %v77_v40, 1 }
 0x1bb   :  { %v79_v42 = vadd.f32 %v78_v41, %v77_v40 }
 0x1bd   :  { %99 = vpush %v79_v42 }
 0x1ee   :  { %s100_s17 = spop %99 }
 0x1ef   :  { %v82_v43 = vstv %s100_s17 }
 0x1f0   :  { %v83_v44 = vsel %vm81_vm6, %v82_v43, 0.0 }
 0x1f1   :  { %84 = vst [vmem:[#allocation2] sm:$0x1] %v83_v44 }
 0x1f2   :  { %115 = shalt.err (!%p112_p4)
}
 0x1f3   :  { %s116_s22 = scalar_lea.hbm %s175_s2, 16 }
 0x1f4   :  { %p117_p5 = scmp.ne.s32.totalorder %s175_s2, %s116_s22  ;;  %p120_p6 = scmp.lt.u32.totalorder %s116_s22, %s175_s2 }
 0x1f6   :  { %p122_p7 = pnand %p120_p6, %p117_p5 }
 0x1f8   :  { %125 = shalt.err (!%p122_p7)
}
 0x1f9   :  { %94 = dma.vmem_to_hbm [thread:$0]  %s92_s1, 16, %s175_s2, [#allocation3]  }
 0x1fa   :  { %126 = dma.done.wait [#allocation3], 16  }
 0x1fb   :  { %127 = vsyncadd [#allocation3], 4294967280 }
 0x1fc   :  { %98 = vsyncpa [#allocation3], 1 }

</bundles_post_ra>
